<compile_context>
chip_gen: v5e
topology: v5e:2x2
jax: 0.10.0
libtpu: 0.0.40
codegen_flags: <defaults>
</compile_context>

<pallas_src>
import functools

import jax
import jax.numpy as jnp
from jax import lax
from jax.experimental import pallas as pl
from jax.experimental.pallas import tpu as pltpu


def _round_up(x, m):
    return ((x + m - 1) // m) * m


def _rgcn_embedding_kernel(nt_ref, x_ref, table_ref, out_ref):
    # nt_ref:    (bm, 1)  int32  node-type index per flattened (batch, node) row
    # x_ref:     (bm, D)  f32    input features
    # table_ref: (R,  D)  f32    embedding table (resident across grid steps)
    # out_ref:   (bm, D)  f32    x + table[node_type]
    bm = nt_ref.shape[0]
    R = table_ref.shape[0]

    idx = nt_ref[...]                                               # (bm, 1)
    onehot = (lax.broadcasted_iota(jnp.int32, (bm, R), 1) == idx)   # (bm, R)
    onehot = onehot.astype(table_ref.dtype)
    emb = jnp.dot(onehot, table_ref[...],
                  preferred_element_type=jnp.float32)               # (bm, D) == exact gather
    out_ref[...] = (x_ref[...] + emb).astype(out_ref.dtype)


@functools.partial(jax.jit, static_argnames=("block_rows",))
def rgcn_embedding(x, node_types, table, *, block_rows=256):
    """x: (N, V, D) float; node_types: (1, V) or (N, V) int; table: (R, D) float."""
    N, V, D = x.shape
    R = table.shape[0]

    # node_types.expand(N, V), flattened together with x into a (N*V, D) slab.
    nt = jnp.broadcast_to(node_types.astype(jnp.int32), (N, V)).reshape(N * V, 1)
    xf = x.reshape(N * V, D)

    rows = N * V
    bm = min(_round_up(block_rows, 8), _round_up(rows, 8))
    rows_p = _round_up(rows, bm)
    if rows_p != rows:  # pad rows so the row grid divides evenly; sliced off below
        xf = jnp.pad(xf, ((0, rows_p - rows), (0, 0)))
        nt = jnp.pad(nt, ((0, rows_p - rows), (0, 0)))

    out = pl.pallas_call(
        _rgcn_embedding_kernel,
        out_shape=jax.ShapeDtypeStruct((rows_p, D), x.dtype),
        grid_spec=pltpu.PrefetchScalarGridSpec(
            num_scalar_prefetch=0,
            grid=(rows_p // bm,),
            in_specs=[pl.BlockSpec((bm, 1), lambda i: (i, 0)),   # node types
                      pl.BlockSpec((bm, D), lambda i: (i, 0)),   # x rows
                      pl.BlockSpec((R, D), lambda i: (0, 0))],   # table, resident
            out_specs=pl.BlockSpec((bm, D), lambda i: (i, 0)),
        ),
        compiler_params=pltpu.CompilerParams(
            dimension_semantics=("parallel",)),
    )(nt, xf, table)

    return out[:rows].reshape(N, V, D)


def reference(x, node_types, table):
    """Pure-JAX mirror of the PyTorch RGCNEmbedding forward."""
    N, V, _ = x.shape
    tnt = jnp.broadcast_to(node_types, (N, V))
    return x + table[tnt]


if __name__ == "__main__":
    N, V, D, R = 8, 16, 128, 3        # batch, graph nodes, embedding dim, num_relation

    key = jax.random.PRNGKey(0)
    k_x, k_t, k_n = jax.random.split(key, 3)
    x = jax.random.normal(k_x, (N, V, D), jnp.float32)
    table = jax.random.normal(k_t, (R, D), jnp.float32)          # nn.Embedding weight
    node_types = jax.random.randint(k_n, (1, V), 0, R, jnp.int32)

    out = rgcn_embedding(x, node_types, table)
    out = jax.block_until_ready(out)

    ref = reference(x, node_types, table)
    assert out.shape == (N, V, D)
    assert jnp.allclose(out, ref, atol=1e-5, rtol=1e-5), "mismatch vs reference"

    print("KERNEL_OK")
</pallas_src>

<mosaic_0001>
module attributes {stable_mosaic.version = 11 : i64} {
  func.func @_rgcn_embedding_kernel(%arg0: i32, %arg1: memref<128x1xi32, #tpu.memory_space<vmem>>, %arg2: memref<128x128xf32, #tpu.memory_space<vmem>>, %arg3: memref<3x128xf32, #tpu.memory_space<vmem>>, %arg4: memref<128x128xf32, #tpu.memory_space<vmem>>) attributes {dimension_semantics = [#tpu.dimension_semantics<parallel>], iteration_bounds = array<i64: 1>, scalar_prefetch = 0 : i64, scratch_operands = 0 : i64, tpu.core_type = #tpu.core_type<tc>, window_params = [{transform_indices = @transform_0, window_bounds = array<i64: 128, 1>}, {transform_indices = @transform_1, window_bounds = array<i64: 128, 128>}, {pipeline_mode = #tpu.pipeline_mode<synchronous>, transform_indices = @transform_2, window_bounds = array<i64: 3, 128>}, {transform_indices = @transform_3, window_bounds = array<i64: 128, 128>}]} {
    %c0 = arith.constant 0 : index
    %c0_0 = arith.constant 0 : index
    %0 = vector.load %arg1[%c0, %c0_0] : memref<128x1xi32, #tpu.memory_space<vmem>>, vector<128x1xi32>
    %1 = tpu.iota {dimensions = array<i32: 1>} : vector<128x3xi32>
    %2 = vector.broadcast %0 : vector<128x1xi32> to vector<128x3xi32>
    %3 = arith.cmpi eq, %1, %2 : vector<128x3xi32>
    %4 = arith.extui %3 : vector<128x3xi1> to vector<128x3xi32>
    %5 = arith.sitofp %4 : vector<128x3xi32> to vector<128x3xf32>
    %c0_1 = arith.constant 0 : index
    %c0_2 = arith.constant 0 : index
    %6 = vector.load %arg3[%c0_1, %c0_2] : memref<3x128xf32, #tpu.memory_space<vmem>>, vector<3x128xf32>
    %cst = arith.constant dense<0.000000e+00> : vector<128x128xf32>
    %7 = tpu.matmul %5, %6, %cst {dimension_numbers = #tpu.dot_dimension_numbers<[1], [0], [0], [1], [0, 0, 1, 1], [], []>} : vector<128x3xf32>, vector<3x128xf32>, vector<128x128xf32> -> vector<128x128xf32>
    %c0_3 = arith.constant 0 : index
    %c0_4 = arith.constant 0 : index
    %8 = vector.load %arg2[%c0_3, %c0_4] : memref<128x128xf32, #tpu.memory_space<vmem>>, vector<128x128xf32>
    %9 = arith.addf %8, %7 : vector<128x128xf32>
    %c0_5 = arith.constant 0 : index
    %c0_6 = arith.constant 0 : index
    %10 = vector.load %arg4[%c0_5, %c0_6] : memref<128x128xf32, #tpu.memory_space<vmem>>, vector<128x128xf32>
    tpu.vector_store %arg4[%c0_5, %c0_6], %9 {strides = array<i32>} : memref<128x128xf32, #tpu.memory_space<vmem>>, vector<128x128xf32>,
    return
  }
  func.func @transform_0(%arg0: i32) -> (i32, i32) {
    %c0_i32 = arith.constant 0 : i32
    %c0_i32_0 = arith.constant 0 : i32
    return %arg0, %c0_i32 : i32, i32
  }
  func.func @transform_1(%arg0: i32) -> (i32, i32) {
    %c0_i32 = arith.constant 0 : i32
    %c0_i32_0 = arith.constant 0 : i32
    return %arg0, %c0_i32 : i32, i32
  }
  func.func @transform_2(%arg0: i32) -> (i32, i32) {
    %c0_i32 = arith.constant 0 : i32
    %c0_i32_0 = arith.constant 0 : i32
    %c0_i32_1 = arith.constant 0 : i32
    return %c0_i32, %c0_i32_0 : i32, i32
  }
  func.func @transform_3(%arg0: i32) -> (i32, i32) {
    %c0_i32 = arith.constant 0 : i32
    %c0_i32_0 = arith.constant 0 : i32
    return %arg0, %c0_i32 : i32, i32
  }
}

</mosaic_0001>

<bundles_post_ra>
// kernel: rgcn_embedding.1
= control target key start
LH: loop header
LB: loop body
LE: loop exit
PB: predicated region body
PF: predicated region fallthrough
CT: control target
= control target key end

     0   :  { %v384_v3 = vmov 0   ;;  %s545_s0 = inlined_call_operand.vmem [shape: s32[128,1], index: 0, kind: input, shape index: {}]   ;;  %s546_s1 = inlined_call_operand.vmem [shape: f32[128,128], index: 1, kind: input, shape index: {}]   ;;  %s547_s2 = inlined_call_operand.vmem [shape: f32[3,128], index: 2, kind: input, shape index: {}]   ;;  %s548_s3 = inlined_call_operand.hbm [shape: f32[128,128], index: 3, kind: output, shape index: {}]  }
   0x1   :  { %v24_v0 = vld [vmem:[%s545_s0 + $0x48] sm:$0xff]  ;;  %v23_v1 = vld [vmem:[%s545_s0 + $0x40] sm:$0xff]  ;;  %357 = vset.pattern.permute.xlu2 %v384_v3  ;;  %356 = vset.pattern.permute.xlu1 %v384_v3 }
   0x2   :  { %v15_v2 = vld [vmem:[%s545_s0] sm:$0xff]  ;;  %355 = vset.pattern.permute.xlu0 %v384_v3  ;;  %61 = vperm.xlu2 %357, %v24_v0  }
   0x3   :  { %58 = vperm.xlu0 %355, %v23_v1   ;;  %34 = vperm.xlu1 %356, %v15_v2  }
   0x4   :  { %8 = vsyncpa [#allocation3], 0  ;;  %v28_v4 = vld [vmem:[%s545_s0 + $0x68] sm:$0xff]  ;;  %v27_v5 = vld [vmem:[%s545_s0 + $0x60] sm:$0xff]  ;;  %vm179_vm0 = vcmask 1042432   ;;  %v31_v19 = vlaneseq  ;;  %vm130_vm1 = vcmask 23552  }
   0x5   :  { %v19_v6 = vld [vmem:[%s545_s0 + $0x20] sm:$0xff]  ;;  %v25_v7 = vld [vmem:[%s545_s0 + $0x50] sm:$0xff]  ;;  %v16_v8 = vld [vmem:[%s545_s0 + $0x8] sm:$0xff]  ;;  %v385_v24 = vmov 0.0   ;;  %s302_s22 = sshll.u32 %s548_s3, 4  ;;  %s387_s25 = smov 128   ;;  %s303_s22 = int_to_ptr.hbm [resolvable:$true] %s302_s22 }
   0x6   :  { %v20_v9 = vld [vmem:[%s545_s0 + $0x28] sm:$0xff]  ;;  %v21_v10 = vld [vmem:[%s545_s0 + $0x30] sm:$0xff]  ;;  %v18_v13 = vld [vmem:[%s545_s0 + $0x18] sm:$0xff]  ;;  %v460_v20 = vand.u32 127, %v31_v19  ;;  %s388_s26 = smov 8  }
   0x7   :  { %v29_v11 = vld [vmem:[%s545_s0 + $0x70] sm:$0xff]  ;;  %v26_v14 = vld [vmem:[%s545_s0 + $0x58] sm:$0xff]  ;;  %v129_v17 = vld [vmem:[%s547_s2] sm:$0x7]  ;;  %s386_s2 = smov [#allocation2]  }
   0x8   :  { %v17_v12 = vld [vmem:[%s545_s0 + $0x10] sm:$0xff]  ;;  %v30_v15 = vld [vmem:[%s545_s0 + $0x78] sm:$0xff]  ;;  %348 = vmatpush.msk.msra.mxu2 %vm179_vm0, %v129_v17  ;;  %330 = vmatpush.msk.msra.mxu0 %vm179_vm0, %v129_v17  ;;  %v248_v53 = vld [vmem:[%s546_s1] sm:$0xff]  ;;  %s300_s19 = sshll.u32 %s386_s2, 4  ;;  %s301_s19 = int_to_ptr.vmem [resolvable:$true] %s300_s19 }
   0x9   :  { %v22_v16 = vld [vmem:[%s545_s0 + $0x38] sm:$0xff]  ;;  %347 = vmatpush.msk.msra.mxu1 %vm179_vm0, %v129_v17  ;;  %349 = vmatpush.msk.msra.mxu3 %vm179_vm0, %v129_v17  ;;  %v256_v56 = vld [vmem:[%s546_s1 + $0x40] sm:$0xff]  ;;  %v257_v62 = vld [vmem:[%s546_s1 + $0x48] sm:$0xff] }
   0xa   :  { %73 = vperm.xlu2 %357, %v28_v4   ;;  %v252_v58 = vld [vmem:[%s546_s1 + $0x20] sm:$0xff]  ;;  %v249_v1 = vld [vmem:[%s546_s1 + $0x8] sm:$0xff] }
   0xb   :  { %70 = vperm.xlu0 %355, %v27_v5   ;;  %46 = vperm.xlu1 %356, %v19_v6   ;;  %v260_v63 = vld [vmem:[%s546_s1 + $0x60] sm:$0xff]  ;;  %v253_v2 = vld [vmem:[%s546_s1 + $0x28] sm:$0xff] }
  0x12   :  { %64 = vperm.xlu2 %357, %v25_v7  }
  0x13   :  { %37 = vperm.xlu0 %355, %v16_v8   ;;  %49 = vperm.xlu1 %356, %v20_v9  }
  0x1a   :  { %52 = vperm.xlu2 %357, %v21_v10   ;;  %v258_v10 = vld [vmem:[%s546_s1 + $0x50] sm:$0xff] }
  0x1b   :  { %76 = vperm.xlu0 %355, %v29_v11   ;;  %40 = vperm.xlu1 %356, %v17_v12   ;;  %v261_v11 = vld [vmem:[%s546_s1 + $0x68] sm:$0xff]  ;;  %v250_v12 = vld [vmem:[%s546_s1 + $0x10] sm:$0xff] }
  0x22   :  { %43 = vperm.xlu2 %357, %v18_v13   ;;  %v254_v13 = vld [vmem:[%s546_s1 + $0x30] sm:$0xff] }
  0x23   :  { %67 = vperm.xlu0 %355, %v26_v14   ;;  %79 = vperm.xlu1 %356, %v30_v15  }
  0x2b   :  { %55 = vperm.xlu0 %355, %v22_v16  }
  0x5c   :  { %v62_v18 = vpop.permute.xlu2 %61 }
  0x5d   :  { %vm90_vm4 = vcmp.eq.s32.totalorder %v460_v20, %v62_v18 }
  0x5e   :  { %v323_v28 = vsel %vm90_vm4, 1.0, %v385_v24 }
  0x64   :  { %v74_v21 = vpop.permute.xlu2 %73 }
  0x65   :  { %vm94_vm7 = vcmp.eq.s32.totalorder %v460_v20, %v74_v21 }
  0x66   :  { %v327_v38 = vsel %vm94_vm7, 1.0, %v385_v24 }
  0x6c   :  { %v65_v27 = vpop.permute.xlu2 %64 }
  0x6d   :  { %vm91_vm8 = vcmp.eq.s32.totalorder %v460_v20, %v65_v27 }
  0x6e   :  { %v324_v39 = vsel %vm91_vm8, 1.0, %v385_v24 }
  0x74   :  { %v53_v35 = vpop.permute.xlu2 %52 }
  0x75   :  { %v59_v22 = vpop.permute.xlu0 %58  ;;  %v35_v23 = vpop.permute.xlu1 %34  ;;  %vm87_vm11 = vcmp.eq.s32.totalorder %v460_v20, %v53_v35 }
  0x76   :  { %vm89_vm2 = vcmp.eq.s32.totalorder %v460_v20, %v59_v22  ;;  %vm81_vm3 = vcmp.eq.s32.totalorder %v460_v20, %v35_v23  ;;  %v320_v42 = vsel %vm87_vm11, 1.0, %v385_v24  ;;  %v262_v22 = vld [vmem:[%s546_s1 + $0x70] sm:$0xff]  ;;  %v251_v23 = vld [vmem:[%s546_s1 + $0x18] sm:$0xff] }
  0x77   :  { %v322_v25 = vsel %vm89_vm2, 1.0, %v385_v24  ;;  %v314_v26 = vsel %vm81_vm3, 1.0, %v385_v24 }
  0x78   :  { %339 = vmatmul.msk.f32.vlgmr.msra.gmra.mxu2 %vm130_vm1, %v322_v25  ;;  %331 = vmatmul.msk.f32.vlgmr.msra.gmra.mxu0 %vm130_vm1, %v314_v26 }
  0x7c   :  { %v44_v45 = vpop.permute.xlu2 %43 }
  0x7d   :  { %v71_v29 = vpop.permute.xlu0 %70  ;;  %v47_v30 = vpop.permute.xlu1 %46  ;;  %vm84_vm14 = vcmp.eq.s32.totalorder %v460_v20, %v44_v45 }
  0x7e   :  { %vm93_vm5 = vcmp.eq.s32.totalorder %v460_v20, %v71_v29  ;;  %vm85_vm6 = vcmp.eq.s32.totalorder %v460_v20, %v47_v30  ;;  %v317_v48 = vsel %vm84_vm14, 1.0, %v385_v24  ;;  %v263_v29 = vld [vmem:[%s546_s1 + $0x78] sm:$0xff] }
  0x7f   :  { %v326_v31 = vsel %vm93_vm5, 1.0, %v385_v24  ;;  %v318_v32 = vsel %vm85_vm6, 1.0, %v385_v24 }
  0x80   :  { %335 = vmatmul.msk.f32.vlgmr.msra.gmra.mxu1 %vm130_vm1, %v318_v32  ;;  %340 = vmatmul.msk.f32.gmra.mxu2 %vm130_vm1, %v323_v28  ;;  %v259_v28 = vld [vmem:[%s546_s1 + $0x58] sm:$0xff] }
  0x81   :  { %343 = vmatmul.msk.f32.vlgmr.msra.gmra.mxu3 %vm130_vm1, %v326_v31  ;;  %v255_v31 = vld [vmem:[%s546_s1 + $0x38] sm:$0xff] }
  0x85   :  { %v38_v33 = vpop.permute.xlu0 %37  ;;  %v50_v34 = vpop.permute.xlu1 %49 }
  0x86   :  { %vm82_vm9 = vcmp.eq.s32.totalorder %v460_v20, %v38_v33  ;;  %vm86_vm10 = vcmp.eq.s32.totalorder %v460_v20, %v50_v34 }
  0x87   :  { %v315_v36 = vsel %vm82_vm9, 1.0, %v385_v24  ;;  %v319_v37 = vsel %vm86_vm10, 1.0, %v385_v24 }
  0x88   :  { %332 = vmatmul.msk.f32.gmra.mxu0 %vm130_vm1, %v315_v36  ;;  %336 = vmatmul.msk.f32.gmra.mxu1 %vm130_vm1, %v319_v37 }
  0x89   :  { %341 = vmatmul.msk.f32.gmra.mxu2 %vm130_vm1, %v324_v39  ;;  %344 = vmatmul.msk.f32.gmra.mxu3 %vm130_vm1, %v327_v38 }
  0x8d   :  { %v77_v40 = vpop.permute.xlu0 %76  ;;  %v41_v41 = vpop.permute.xlu1 %40 }
  0x8e   :  { %vm95_vm12 = vcmp.eq.s32.totalorder %v460_v20, %v77_v40  ;;  %vm83_vm13 = vcmp.eq.s32.totalorder %v460_v20, %v41_v41 }
  0x8f   :  { %v328_v43 = vsel %vm95_vm12, 1.0, %v385_v24  ;;  %v316_v44 = vsel %vm83_vm13, 1.0, %v385_v24 }
  0x90   :  { %333 = vmatmul.msk.f32.gmra.mxu0 %vm130_vm1, %v316_v44  ;;  %337 = vmatmul.msk.f32.gmra.mxu1 %vm130_vm1, %v320_v42 }
  0x91   :  { %345 = vmatmul.msk.f32.gmra.mxu3 %vm130_vm1, %v328_v43 }
  0x95   :  { %v68_v46 = vpop.permute.xlu0 %67  ;;  %v80_v47 = vpop.permute.xlu1 %79 }
  0x96   :  { %vm92_vm15 = vcmp.eq.s32.totalorder %v460_v20, %v68_v46  ;;  %vm96_vm0 = vcmp.eq.s32.totalorder %v460_v20, %v80_v47 }
  0x97   :  { %v325_v49 = vsel %vm92_vm15, 1.0, %v385_v24  ;;  %v329_v50 = vsel %vm96_vm0, 1.0, %v385_v24 }
  0x98   :  { %334 = vmatmul.msk.f32.gmra.mxu0 %vm130_vm1, %v317_v48  ;;  %342 = vmatmul.msk.f32.gmra.mxu2 %vm130_vm1, %v325_v49 }
  0x99   :  { %346 = vmatmul.msk.f32.gmra.mxu3 %vm130_vm1, %v329_v50 }
  0x9d   :  { %v56_v51 = vpop.permute.xlu0 %55 }
  0x9e   :  { %vm88_vm2 = vcmp.eq.s32.totalorder %v460_v20, %v56_v51 }
  0x9f   :  { %v321_v52 = vsel %vm88_vm2, 1.0, %v385_v24 }
  0xa0   :  { %338 = vmatmul.msk.f32.gmra.mxu1 %vm130_vm1, %v321_v52 }
  0xf5   :  { %v200_v54 = vpop.f32.mrf.mxu0 }
  0xf6   :  { %v264_v55 = vadd.f32 %v248_v53, %v200_v54 }
  0xf8   :  { %280 = vst [vmem:[#allocation2] sm:$0xff] %v264_v55 }
  0xfb   :  { %v224_v57 = vpop.f32.mrf.mxu2 }
  0xfc   :  { %v272_v59 = vadd.f32 %v256_v56, %v224_v57 }
  0xfd   :  { %v212_v60 = vpop.f32.mrf.mxu1 }
  0xfe   :  { %288 = vst [vmem:[#allocation2 + $0x40] sm:$0xff] %v272_v59  ;;  %v268_v61 = vadd.f32 %v252_v58, %v212_v60 }
 0x100   :  { %284 = vst [vmem:[#allocation2 + $0x20] sm:$0xff] %v268_v61 }
 0x103   :  { %v227_v0 = vpop.f32.mrf.mxu2 }
 0x104   :  { %v273_v3 = vadd.f32 %v257_v62, %v227_v0  ;;  %v236_v4 = vpop.f32.mrf.mxu3 }
 0x105   :  { %v276_v5 = vadd.f32 %v260_v63, %v236_v4  ;;  %v203_v6 = vpop.f32.mrf.mxu0  ;;  %v215_v7 = vpop.f32.mrf.mxu1 }
 0x106   :  { %289 = vst [vmem:[#allocation2 + $0x48] sm:$0xff] %v273_v3  ;;  %v265_v8 = vadd.f32 %v249_v1, %v203_v6  ;;  %v269_v9 = vadd.f32 %v253_v2, %v215_v7 }
 0x107   :  { %292 = vst [vmem:[#allocation2 + $0x60] sm:$0xff] %v276_v5 }
 0x108   :  { %281 = vst [vmem:[#allocation2 + $0x8] sm:$0xff] %v265_v8 }
 0x109   :  { %285 = vst [vmem:[#allocation2 + $0x28] sm:$0xff] %v269_v9 }
 0x10c   :  { %v230_v14 = vpop.f32.mrf.mxu2  ;;  %v239_v15 = vpop.f32.mrf.mxu3 }
 0x10d   :  { %v274_v16 = vadd.f32 %v258_v10, %v230_v14  ;;  %v277_v17 = vadd.f32 %v261_v11, %v239_v15  ;;  %v206_v18 = vpop.f32.mrf.mxu0  ;;  %v218_v19 = vpop.f32.mrf.mxu1 }
 0x10e   :  { %v266_v20 = vadd.f32 %v250_v12, %v206_v18  ;;  %v270_v21 = vadd.f32 %v254_v13, %v218_v19 }
 0x10f   :  { %290 = vst [vmem:[#allocation2 + $0x50] sm:$0xff] %v274_v16 }
 0x110   :  { %293 = vst [vmem:[#allocation2 + $0x68] sm:$0xff] %v277_v17 }
 0x111   :  { %282 = vst [vmem:[#allocation2 + $0x10] sm:$0xff] %v266_v20 }
 0x112   :  { %286 = vst [vmem:[#allocation2 + $0x30] sm:$0xff] %v270_v21 }
 0x114   :  { %v242_v24 = vpop.f32.mrf.mxu3 }
 0x115   :  { %v278_v25 = vadd.f32 %v262_v22, %v242_v24  ;;  %v209_v26 = vpop.f32.mrf.mxu0 }
 0x116   :  { %v267_v27 = vadd.f32 %v251_v23, %v209_v26 }
 0x117   :  { %294 = vst [vmem:[#allocation2 + $0x70] sm:$0xff] %v278_v25 }
 0x118   :  { %283 = vst [vmem:[#allocation2 + $0x18] sm:$0xff] %v267_v27 }
 0x11b   :  { %v233_v30 = vpop.f32.mrf.mxu2 }
 0x11c   :  { %v275_v32 = vadd.f32 %v259_v28, %v233_v30  ;;  %v245_v33 = vpop.f32.mrf.mxu3 }
 0x11d   :  { %v279_v34 = vadd.f32 %v263_v29, %v245_v33  ;;  %v221_v35 = vpop.f32.mrf.mxu1 }
 0x11e   :  { %291 = vst [vmem:[#allocation2 + $0x58] sm:$0xff] %v275_v32  ;;  %v271_v36 = vadd.f32 %v255_v31, %v221_v35 }
 0x11f   :  { %295 = vst [vmem:[#allocation2 + $0x78] sm:$0xff] %v279_v34 }
 0x120   :  { %287 = vst [vmem:[#allocation2 + $0x38] sm:$0xff] %v271_v36 }
 0x121   :  { %308 = dma.vmem_to_hbm [thread:$0]  %s301_s19, 2048, %s303_s22, [#allocation3], %s387_s25, %s387_s25, %s388_s26  }
 0x122   :  { %382 = dma.done.wait [#allocation3], 2048  }
 0x123   :  { %383 = vsyncadd [#allocation3], 4294965248 }
 0x124   :  { %313 = vsyncpa [#allocation3], 1 }

</bundles_post_ra>
